<compile_context>
chip_gen: v7x
topology: tpu7x:2x2x1
jax: 0.10.0
libtpu: 0.0.40
codegen_flags: <defaults>
</compile_context>

<pallas_src>
import functools
import math

import jax
import jax.numpy as jnp
from jax.experimental import pallas as pl
from jax.experimental.pallas import tpu as pltpu


# --------------------------------------------------------------------------------------
# Pallas kernel: fused discriminator forward for one row-tile of the batch
# --------------------------------------------------------------------------------------

def _discriminator_kernel(x_ref, w1_ref, b1_ref, w2_ref, b2_ref, w3_ref, b3_ref,
                          feat_ref, out_ref):
    """One batch row-tile of the full discriminator forward.

    x_ref:   (TB, K)   flattened input rows
    w1_ref:  (K, H)    first feature weight (already transposed)
    b1_ref:  (1, H)
    w2_ref:  (H, H)    second feature weight (already transposed)
    b2_ref:  (1, H)
    w3_ref:  (1, H)    classifier weight as a row vector
    b3_ref:  (1, 1)
    feat_ref:(TB, H)   feature output
    out_ref: (TB, 1)   sigmoid(classifier) output
    """
    # feature = LeakyReLU(x @ W1 + b1, 0.2)
    h1 = jnp.dot(x_ref[...], w1_ref[...], preferred_element_type=jnp.float32) + b1_ref[...]
    h1 = jnp.where(h1 > 0, h1, 0.2 * h1)

    # feature = LeakyReLU(h1 @ W2 + b2, 0.2)
    h2 = jnp.dot(h1, w2_ref[...], preferred_element_type=jnp.float32) + b2_ref[...]
    h2 = jnp.where(h2 > 0, h2, 0.2 * h2)
    feat_ref[...] = h2

    # classifier head folded into the epilogue: sigmoid(h2 . w3 + b3)
    logit = jnp.sum(h2 * w3_ref[...], axis=-1, keepdims=True) + b3_ref[...]
    out_ref[...] = jax.nn.sigmoid(logit)


def _pick_row_tile(batch):
    # Largest convenient row tile that divides the batch; fall back to the whole batch
    # for small / awkward sizes (block == full dim is always legal).
    for tb in (1024, 512, 256, 128, 64, 32, 16, 8):
        if batch % tb == 0:
            return tb
    return batch


def discriminator_forward(params, x):
    """x: (B, *rest) -> (feature: (B, H), output: (B,))  — matches the PyTorch module."""
    B = x.shape[0]
    x_flat = x.reshape(B, -1).astype(jnp.float32)          # torch.flatten(x, 1, -1)
    K = x_flat.shape[1]
    H = params["w1_t"].shape[1]

    TB = _pick_row_tile(B)
    grid = (pl.cdiv(B, TB),)

    flops = 2 * B * K * H + 2 * B * H * H + 2 * B * H
    bytes_accessed = 4 * (B * K + K * H + H * H + 2 * H + B * H + B)
    cost = pl.CostEstimate(flops=flops, transcendentals=B, bytes_accessed=bytes_accessed)

    feat, out = pl.pallas_call(
        _discriminator_kernel,
        out_shape=(
            jax.ShapeDtypeStruct((B, H), jnp.float32),
            jax.ShapeDtypeStruct((B, 1), jnp.float32),
        ),
        grid=grid,
        in_specs=[
            pl.BlockSpec((TB, K), lambda i: (i, 0)),       # x row-tile (only recurring DMA)
            pl.BlockSpec((K, H), lambda i: (0, 0)),        # resident weights / biases
            pl.BlockSpec((1, H), lambda i: (0, 0)),
            pl.BlockSpec((H, H), lambda i: (0, 0)),
            pl.BlockSpec((1, H), lambda i: (0, 0)),
            pl.BlockSpec((1, H), lambda i: (0, 0)),
            pl.BlockSpec((1, 1), lambda i: (0, 0)),
        ],
        out_specs=(
            pl.BlockSpec((TB, H), lambda i: (i, 0)),
            pl.BlockSpec((TB, 1), lambda i: (i, 0)),
        ),
        compiler_params=pltpu.CompilerParams(
            dimension_semantics=("parallel",),             # row tiles shard across TCs (v7x)
        ),
        cost_estimate=cost,
    )(x_flat, params["w1_t"], params["b1"], params["w2_t"], params["b2"],
      params["w3_row"], params["b3"])

    return feat, out.reshape(B)                            # output.view(x.shape[0])


# --------------------------------------------------------------------------------------
# Parameter construction (mirrors nn.Linear init and shapes)
# --------------------------------------------------------------------------------------

def init_discriminator_params(key, input_dim, window_size, hidden_dim):
    in_features = input_dim * window_size

    def uni(k, shape, fan_in):
        bound = 1.0 / math.sqrt(fan_in)
        return jax.random.uniform(k, shape, jnp.float32, -bound, bound)

    ks = jax.random.split(key, 6)
    w1 = uni(ks[0], (hidden_dim, in_features), in_features)   # nn.Linear(K, H)
    b1 = uni(ks[1], (hidden_dim,), in_features)
    w2 = uni(ks[2], (hidden_dim, hidden_dim), hidden_dim)      # nn.Linear(H, H)
    b2 = uni(ks[3], (hidden_dim,), hidden_dim)
    w3 = uni(ks[4], (1, hidden_dim), hidden_dim)               # nn.Linear(H, 1)
    b3 = uni(ks[5], (1,), hidden_dim)

    return {
        "w1_t": w1.T,                 # (K, H)
        "b1": b1[None, :],            # (1, H)
        "w2_t": w2.T,                 # (H, H)
        "b2": b2[None, :],            # (1, H)
        "w3_row": w3,                 # (1, H) — used as an elementwise row, no transpose needed
        "b3": b3[None, :],            # (1, 1)
    }


# --------------------------------------------------------------------------------------

if __name__ == "__main__":
    # Small, module-consistent shapes: x is (batch, window_size, input_dim),
    # flattened to (batch, input_dim * window_size) inside the forward.
    batch, window_size, input_dim, hidden_dim = 2, 16, 4, 32

    key = jax.random.PRNGKey(0)
    k_params, k_x = jax.random.split(key)
    params = init_discriminator_params(k_params, input_dim, window_size, hidden_dim)
    x = jax.random.normal(k_x, (batch, window_size, input_dim), dtype=jnp.float32)

    fwd = jax.jit(discriminator_forward)
    feature, output = fwd(params, x)
    jax.block_until_ready((feature, output))

    assert feature.shape == (batch, hidden_dim), feature.shape
    assert output.shape == (batch,), output.shape
    assert bool(jnp.all(jnp.isfinite(feature)))
    assert bool(jnp.all(jnp.isfinite(output)))
    assert bool(jnp.all((output >= 0.0) & (output <= 1.0)))
    print("KERNEL_OK")
</pallas_src>

<mosaic_0001>
module attributes {stable_mosaic.version = 11 : i64} {
  func.func @_discriminator_kernel(%arg0: i32, %arg1: memref<2x64xf32, #tpu.memory_space<vmem>>, %arg2: memref<64x32xf32, #tpu.memory_space<vmem>>, %arg3: memref<1x32xf32, #tpu.memory_space<vmem>>, %arg4: memref<32x32xf32, #tpu.memory_space<vmem>>, %arg5: memref<1x32xf32, #tpu.memory_space<vmem>>, %arg6: memref<1x32xf32, #tpu.memory_space<vmem>>, %arg7: memref<1x1xf32, #tpu.memory_space<vmem>>, %arg8: memref<2x32xf32, #tpu.memory_space<vmem>>, %arg9: memref<2x1xf32, #tpu.memory_space<vmem>>) attributes {dimension_semantics = [#tpu.dimension_semantics<parallel>], iteration_bounds = array<i64: 1>, scalar_prefetch = 0 : i64, scratch_operands = 0 : i64, tpu.core_type = #tpu.core_type<tc>, window_params = [{transform_indices = @transform_0, window_bounds = array<i64: 2, 64>}, {pipeline_mode = #tpu.pipeline_mode<synchronous>, transform_indices = @transform_1, window_bounds = array<i64: 64, 32>}, {pipeline_mode = #tpu.pipeline_mode<synchronous>, transform_indices = @transform_2, window_bounds = array<i64: 1, 32>}, {pipeline_mode = #tpu.pipeline_mode<synchronous>, transform_indices = @transform_3, window_bounds = array<i64: 32, 32>}, {pipeline_mode = #tpu.pipeline_mode<synchronous>, transform_indices = @transform_4, window_bounds = array<i64: 1, 32>}, {pipeline_mode = #tpu.pipeline_mode<synchronous>, transform_indices = @transform_5, window_bounds = array<i64: 1, 32>}, {pipeline_mode = #tpu.pipeline_mode<synchronous>, transform_indices = @transform_6, window_bounds = array<i64: 1, 1>}, {transform_indices = @transform_7, window_bounds = array<i64: 2, 32>}, {transform_indices = @transform_8, window_bounds = array<i64: 2, 1>}]} {
    %c0 = arith.constant 0 : index
    %c0_0 = arith.constant 0 : index
    %0 = vector.load %arg1[%c0, %c0_0] : memref<2x64xf32, #tpu.memory_space<vmem>>, vector<2x64xf32>
    %c0_1 = arith.constant 0 : index
    %c0_2 = arith.constant 0 : index
    %1 = vector.load %arg2[%c0_1, %c0_2] : memref<64x32xf32, #tpu.memory_space<vmem>>, vector<64x32xf32>
    %cst = arith.constant dense<0.000000e+00> : vector<2x32xf32>
    %2 = tpu.matmul %0, %1, %cst {dimension_numbers = #tpu.dot_dimension_numbers<[1], [0], [0], [1], [0, 0, 1, 1], [], []>} : vector<2x64xf32>, vector<64x32xf32>, vector<2x32xf32> -> vector<2x32xf32>
    %c0_3 = arith.constant 0 : index
    %c0_4 = arith.constant 0 : index
    %3 = vector.load %arg3[%c0_3, %c0_4] : memref<1x32xf32, #tpu.memory_space<vmem>>, vector<1x32xf32>
    %4 = vector.broadcast %3 : vector<1x32xf32> to vector<2x32xf32>
    %5 = arith.addf %2, %4 : vector<2x32xf32>
    %cst_5 = arith.constant 0.000000e+00 : f32
    %6 = vector.broadcast %cst_5 : f32 to vector<2x32xf32>
    %7 = arith.cmpf ogt, %5, %6 : vector<2x32xf32>
    %cst_6 = arith.constant 2.000000e-01 : f32
    %8 = vector.broadcast %cst_6 : f32 to vector<2x32xf32>
    %9 = arith.mulf %8, %5 : vector<2x32xf32>
    %10 = arith.select %7, %5, %9 : vector<2x32xi1>, vector<2x32xf32>
    %c0_7 = arith.constant 0 : index
    %c0_8 = arith.constant 0 : index
    %11 = vector.load %arg4[%c0_7, %c0_8] : memref<32x32xf32, #tpu.memory_space<vmem>>, vector<32x32xf32>
    %cst_9 = arith.constant dense<0.000000e+00> : vector<2x32xf32>
    %12 = tpu.matmul %10, %11, %cst_9 {dimension_numbers = #tpu.dot_dimension_numbers<[1], [0], [0], [1], [0, 0, 1, 1], [], []>} : vector<2x32xf32>, vector<32x32xf32>, vector<2x32xf32> -> vector<2x32xf32>
    %c0_10 = arith.constant 0 : index
    %c0_11 = arith.constant 0 : index
    %13 = vector.load %arg5[%c0_10, %c0_11] : memref<1x32xf32, #tpu.memory_space<vmem>>, vector<1x32xf32>
    %14 = vector.broadcast %13 : vector<1x32xf32> to vector<2x32xf32>
    %15 = arith.addf %12, %14 : vector<2x32xf32>
    %cst_12 = arith.constant 0.000000e+00 : f32
    %16 = vector.broadcast %cst_12 : f32 to vector<2x32xf32>
    %17 = arith.cmpf ogt, %15, %16 : vector<2x32xf32>
    %cst_13 = arith.constant 2.000000e-01 : f32
    %18 = vector.broadcast %cst_13 : f32 to vector<2x32xf32>
    %19 = arith.mulf %18, %15 : vector<2x32xf32>
    %20 = arith.select %17, %15, %19 : vector<2x32xi1>, vector<2x32xf32>
    %c0_14 = arith.constant 0 : index
    %c0_15 = arith.constant 0 : index
    %21 = vector.load %arg8[%c0_14, %c0_15] : memref<2x32xf32, #tpu.memory_space<vmem>>, vector<2x32xf32>
    tpu.vector_store %arg8[%c0_14, %c0_15], %20 {strides = array<i32>} : memref<2x32xf32, #tpu.memory_space<vmem>>, vector<2x32xf32>,
    %c0_16 = arith.constant 0 : index
    %c0_17 = arith.constant 0 : index
    %22 = vector.load %arg6[%c0_16, %c0_17] : memref<1x32xf32, #tpu.memory_space<vmem>>, vector<1x32xf32>
    %23 = vector.broadcast %22 : vector<1x32xf32> to vector<2x32xf32>
    %24 = arith.mulf %20, %23 : vector<2x32xf32>
    %cst_18 = arith.constant dense<0.000000e+00> : vector<2xf32>
    %25 = vector.multi_reduction <add>, %24, %cst_18 [1] : vector<2x32xf32> to vector<2xf32>
    %26 = vector.shape_cast %25 : vector<2xf32> to vector<2x1xf32>
    %c0_19 = arith.constant 0 : index
    %c0_20 = arith.constant 0 : index
    %27 = vector.load %arg7[%c0_19, %c0_20] : memref<1x1xf32, #tpu.memory_space<vmem>>, vector<1x1xf32>
    %28 = vector.broadcast %27 : vector<1x1xf32> to vector<2x1xf32>
    %29 = arith.addf %26, %28 : vector<2x1xf32>
    %30 = arith.negf %29 : vector<2x1xf32>
    %31 = math.exp %30 : vector<2x1xf32>
    %cst_21 = arith.constant 1.000000e+00 : f32
    %32 = vector.broadcast %cst_21 : f32 to vector<2x1xf32>
    %33 = arith.addf %32, %31 : vector<2x1xf32>
    %34 = arith.divf %32, %33 : vector<2x1xf32>
    %c0_22 = arith.constant 0 : index
    %c0_23 = arith.constant 0 : index
    %35 = vector.load %arg9[%c0_22, %c0_23] : memref<2x1xf32, #tpu.memory_space<vmem>>, vector<2x1xf32>
    tpu.vector_store %arg9[%c0_22, %c0_23], %34 {strides = array<i32>} : memref<2x1xf32, #tpu.memory_space<vmem>>, vector<2x1xf32>,
    return
  }
  func.func @transform_0(%arg0: i32) -> (i32, i32) {
    %c0_i32 = arith.constant 0 : i32
    %c0_i32_0 = arith.constant 0 : i32
    return %arg0, %c0_i32 : i32, i32
  }
  func.func @transform_1(%arg0: i32) -> (i32, i32) {
    %c0_i32 = arith.constant 0 : i32
    %c0_i32_0 = arith.constant 0 : i32
    %c0_i32_1 = arith.constant 0 : i32
    return %c0_i32, %c0_i32_0 : i32, i32
  }
  func.func @transform_2(%arg0: i32) -> (i32, i32) {
    %c0_i32 = arith.constant 0 : i32
    %c0_i32_0 = arith.constant 0 : i32
    %c0_i32_1 = arith.constant 0 : i32
    return %c0_i32, %c0_i32_0 : i32, i32
  }
  func.func @transform_3(%arg0: i32) -> (i32, i32) {
    %c0_i32 = arith.constant 0 : i32
    %c0_i32_0 = arith.constant 0 : i32
    %c0_i32_1 = arith.constant 0 : i32
    return %c0_i32, %c0_i32_0 : i32, i32
  }
  func.func @transform_4(%arg0: i32) -> (i32, i32) {
    %c0_i32 = arith.constant 0 : i32
    %c0_i32_0 = arith.constant 0 : i32
    %c0_i32_1 = arith.constant 0 : i32
    return %c0_i32, %c0_i32_0 : i32, i32
  }
  func.func @transform_5(%arg0: i32) -> (i32, i32) {
    %c0_i32 = arith.constant 0 : i32
    %c0_i32_0 = arith.constant 0 : i32
    %c0_i32_1 = arith.constant 0 : i32
    return %c0_i32, %c0_i32_0 : i32, i32
  }
  func.func @transform_6(%arg0: i32) -> (i32, i32) {
    %c0_i32 = arith.constant 0 : i32
    %c0_i32_0 = arith.constant 0 : i32
    %c0_i32_1 = arith.constant 0 : i32
    return %c0_i32, %c0_i32_0 : i32, i32
  }
  func.func @transform_7(%arg0: i32) -> (i32, i32) {
    %c0_i32 = arith.constant 0 : i32
    %c0_i32_0 = arith.constant 0 : i32
    return %arg0, %c0_i32 : i32, i32
  }
  func.func @transform_8(%arg0: i32) -> (i32, i32) {
    %c0_i32 = arith.constant 0 : i32
    %c0_i32_0 = arith.constant 0 : i32
    return %arg0, %c0_i32 : i32, i32
  }
}

</mosaic_0001>

<bundles_post_ra>
// kernel: discriminator_forward.1
= control target key start
LH: loop header
LB: loop body
LE: loop exit
PB: predicated region body
PF: predicated region fallthrough
CT: control target
= control target key end

     0   :  { %s475_s0 = inlined_call_operand.vmem [shape: f32[2,64], index: 0, kind: input, shape index: {}]   ;;  %s476_s1 = inlined_call_operand.vmem [shape: f32[64,32], index: 1, kind: input, shape index: {}]   ;;  %s477_s2 = inlined_call_operand.vmem [shape: f32[1,32], index: 2, kind: input, shape index: {}]   ;;  %s478_s3 = inlined_call_operand.vmem [shape: f32[32,32], index: 3, kind: input, shape index: {}]   ;;  %s479_s4 = inlined_call_operand.vmem [shape: f32[1,32], index: 4, kind: input, shape index: {}]   ;;  %s480_s5 = inlined_call_operand.vmem [shape: f32[1,32], index: 5, kind: input, shape index: {}]   ;;  %s481_s6 = inlined_call_operand.<no memory space> [shape: f32[1,1], index: 6, kind: input, shape index: {}]   ;;  %s482_s7 = inlined_call_operand.hbm [shape: f32[2,32], index: 7, kind: output, shape index: {0}]   ;;  %s483_s8 = inlined_call_operand.vmem [shape: f32[2,1], index: 8, kind: output, shape index: {1}]  }
   0x1   :  { %v14_v0 = vstv %s481_s6 }
   0x2   :  { %15 = vst [vmem:[#allocation2] sm:$0x1] %v14_v0 }
   0x3   :  { %v32_v1 = vld [vmem:[%s476_s1] sm:$0xff]  ;;  %v33_v2 = vld [vmem:[%s476_s1 + $0x8] sm:$0xff]  ;;  %v34_v3 = vld [vmem:[%s476_s1 + $0x10] sm:$0xff]  ;;  %v360_v4 = vmov 0.0|0.0   ;;  %vm361_vm0 = vmmov 0   ;;  %v362_v7 = vmov 0.0  }
   0x4   :  { %310 = vmatprep.subr.bf16.mxu0 %v360_v4  ;;  %v311_v5 = vpack.c.bf16 %v33_v2, %v32_v1  ;;  %v35_v6 = vld [vmem:[%s476_s1 + $0x18] sm:$0xff]  ;;  %296 = vmatprep.mubr.msk.f32.mxu0 %vm361_vm0, %v362_v7  ;;  %v124_v9 = vld [vmem:[%s478_s3] sm:$0xff]  ;;  %v125_v10 = vld [vmem:[%s478_s3 + $0x8] sm:$0xff] }
   0x5   :  { %322 = vmatprep.subr.bf16.mxu1 %v360_v4  ;;  %307 = vmatprep.mubr.msk.f32.mxu1 %vm361_vm0, %v362_v7  ;;  %v314_v8 = vpack.c.bf16 %v35_v6, %v34_v3  ;;  %v36_v11 = vld [vmem:[%s476_s1 + $0x20] sm:$0xff]  ;;  %v37_v12 = vld [vmem:[%s476_s1 + $0x28] sm:$0xff]  ;;  %v323_v13 = vpack.c.bf16 %v125_v10, %v124_v9 }
   0x6   :  { %312 = vmatpush3.bf16.msra.mxu0 %v311_v5 }
   0x7   :  { %313 = vmatprep.subr.bf16.mxu0 %v360_v4 }
   0x8   :  { %16 = vsyncpa [#allocation4], 0  ;;  %324 = vmatpush3.bf16.msra.mxu1 %v323_v13  ;;  %v317_v14 = vpack.c.bf16 %v37_v12, %v36_v11  ;;  %v38_v15 = vld [vmem:[%s476_s1 + $0x30] sm:$0xff]  ;;  %v39_v16 = vld [vmem:[%s476_s1 + $0x38] sm:$0xff]  ;;  %vm47_vm1 = vcmask 523264   ;;  %vm135_vm3 = vcmask 261120  }
   0x9   :  { %325 = vmatprep.subr.bf16.mxu1 %v360_v4  ;;  %v320_v17 = vpack.c.bf16 %v39_v16, %v38_v15  ;;  %v31_v18 = vld [vmem:[%s475_s0] sm:$0x3]  ;;  %v126_v19 = vld [vmem:[%s478_s3 + $0x10] sm:$0xff]  ;;  %v127_v20 = vld [vmem:[%s478_s3 + $0x18] sm:$0xff]  ;;  %vm212_vm5 = vcmask 254976   ;;  %s363_s12 = smov [#allocation3]  }
   0xa   :  { %315 = vmatpush3.bf16.msra.mxu0 %v314_v8  ;;  %v326_v21 = vpack.c.bf16 %v127_v20, %v126_v19  ;;  %v259_v22 = vld [vmem:[%s477_s2] ss:$0 sm:$0xff]  ;;  %s247_s13 = sshll.u32 %s363_s12, 4  ;;  %s248_s13 = int_to_ptr.vmem [resolvable:$true] %s247_s13 }
   0xb   :  { %316 = vmatprep.subr.bf16.mxu0 %v360_v4  ;;  %v261_v28 = vld [vmem:[%s479_s4] ss:$0 sm:$0xff]  ;;  %s336_s14 = scalar_lea.vmem %s248_s13, 32  ;;  %p341_p1 = scmp.lt.s32.totalorder %s248_s13, %s248_s13 }
   0xc   :  { %327 = vmatpush3.bf16.msra.mxu1 %v326_v21  ;;  %v263_v33 = vld [vmem:[%s480_s5] ss:$0 sm:$0xff]  ;;  %p337_p0 = scmp.ne.s32.totalorder %s248_s13, %s336_s14  ;;  %p342_p2 = scmp.lt.s32.totalorder %s336_s14, %s336_s14 }
   0xe   :  { %318 = vmatpush3.bf16.msra.mxu0 %v317_v14  ;;  %p343_p3 = por %p342_p2, %p341_p1 }
   0xf   :  { %319 = vmatprep.subr.bf16.mxu0 %v360_v4 }
  0x10   :  { %p344_p4 = pnand %p343_p3, %p337_p0 }
  0x12   :  { %321 = vmatpush3.bf16.msra.mxu0 %v320_v17 }
  0x15   :  { %297 = vmatmul.mubr.msk.f32.vlgmr.msra.gmra.mrb[0].mxu0 %vm47_vm1, %v31_v18 }
  0xe8   :  { %v117_v23 = vpop.f32.mrb[0].mxu0 }
  0xe9   :  { %v118_v24 = vadd.f32 %v259_v22, %v117_v23  ;;  %v298_v25 = vpop.f32.mrb[1].mxu0 }
  0xeb   :  { %vm121_vm2 = vcmp.gt.f32.partialorder %v118_v24, 0.0  ;;  %v122_v26 = vmul.f32 0.2, %v118_v24 }
  0xed   :  { %v123_v27 = vsel %vm121_vm2, %v118_v24, %v122_v26 }
  0xee   :  { %308 = vmatmul.mubr.msk.f32.vlgmr.msra.gmra.mrb[0].mxu1 %vm135_vm3, %v123_v27 }
 0x1c1   :  { %v205_v29 = vpop.f32.mrb[0].mxu1 }
 0x1c2   :  { %v206_v30 = vadd.f32 %v261_v28, %v205_v29  ;;  %v309_v31 = vpop.f32.mrb[1].mxu1 }
 0x1c4   :  { %v210_v32 = vmul.f32 0.2, %v206_v30  ;;  %vm209_vm4 = vcmp.gt.f32.partialorder %v206_v30, 0.0 }
 0x1c6   :  { %v211_v34 = vsel %vm209_vm4, %v206_v30, %v210_v32 }
 0x1c7   :  { %v221_v35 = vmul.f32 %v263_v33, %v211_v34  ;;  %213 = vst.msk [vmem:[#allocation3] sm:$0x3] %vm212_vm5, %v211_v34 }
 0x1c9   :  { %v222_v36 = vsel %vm212_vm5, %v221_v35, 0.0 }
 0x1ca   :  { %223 = vadd.xlane.f32.xlu0 %v222_v36 }
 0x1cb   :  { %347 = shalt.err (!%p344_p4)
}
 0x1cc   :  { %s348_s15 = scalar_lea.hbm %s482_s7, 32 }
 0x1cd   :  { %p349_p5 = scmp.ne.s32.totalorder %s482_s7, %s348_s15  ;;  %p352_p6 = scmp.lt.u32.totalorder %s348_s15, %s482_s7 }
 0x1cf   :  { %p354_p7 = pnand %p352_p6, %p349_p5 }
 0x1d1   :  { %357 = shalt.err (!%p354_p7)
}
 0x1d2   :  { %250 = dma.vmem_to_hbm [thread:$0]  %s248_s13, 32, %s482_s7, [#allocation4]   ;;  %v264_v37 = vld [vmem:[#allocation2] ss:$0 sm:$0xff]  ;;  %vm239_vm6 = vcmask 1024  }
 0x257   :  { %v224_v38 = vpop.xlane.xlu0 %223 }
 0x258   :  { %v232_v39 = vadd.f32 %v264_v37, %v224_v38 }
 0x25a   :  { %v265_v40 = vmul.f32 -1.442695, %v232_v39 }
 0x25c   :  { %332 = vpow2.f32 %v265_v40 }
 0x266   :  { %v333_v41 = vpop.eup %332 }
 0x267   :  { %v236_v42 = vadd.f32 1.0, %v333_v41 }
 0x269   :  { %334 = vrcp.f32 %v236_v42 }
 0x273   :  { %v335_v43 = vpop.eup %334 }
 0x274   :  { %240 = vst.msk [vmem:[%s483_s8] sm:$0x3] %vm239_vm6, %v335_v43 }
 0x275   :  { %358 = dma.done.wait [#allocation4], 32  }
 0x276   :  { %359 = vsyncadd [#allocation4], 4294967264 }
 0x277   :  { %258 = vsyncpa [#allocation4], 1 }

</bundles_post_ra>
